<compile_context>
chip_gen: v7x
topology: tpu7x:2x2x1
jax: 0.10.0
libtpu: 0.0.40
codegen_flags: <defaults>
</compile_context>

<pallas_src>
import functools

import jax
import jax.numpy as jnp
from jax.experimental import pallas as pl
from jax.experimental.pallas import tpu as pltpu


def _round_up(x, m):
    return ((x + m - 1) // m) * m


def _make_fused_q_kernel(n_agents, obs_dim):
    """Build a kernel: q = relu(sum_i obs_i @ W1_i + b1) @ W2 + b2 (all in VMEM)."""

    def kernel(*refs):
        obs_refs = refs[:n_agents]
        w1_ref, b1_ref, w2_ref, b2_ref, q_ref = refs[n_agents:]

        # Fused "concat": accumulate per-agent partial products into h (f32).
        h = jnp.dot(
            obs_refs[0][...],
            w1_ref[0:obs_dim, :],
            preferred_element_type=jnp.float32,
        )
        for i in range(1, n_agents):
            h = h + jnp.dot(
                obs_refs[i][...],
                w1_ref[i * obs_dim:(i + 1) * obs_dim, :],
                preferred_element_type=jnp.float32,
            )

        # Bias + ReLU in f32 (VPU work stays f32; v5e has no bf16 VPU path).
        h = jnp.maximum(h + b1_ref[...], 0.0)

        # Second matmul: bf16 MXU inputs, f32 accumulation, lane-dense output.
        q = jnp.dot(
            h.astype(w2_ref.dtype),
            w2_ref[...],
            preferred_element_type=jnp.float32,
        )
        q_ref[...] = (q + b2_ref[...]).astype(q_ref.dtype)

    return kernel


def your_dnn_forward(observation_list, params, *, block_batch=128):
    """Fused per-agent-obs -> Q-values forward pass in a single pallas_call."""
    w1, b1, w2, b2 = params
    n_agents = len(observation_list)
    B, obs_dim = observation_list[0].shape
    D, H = w1.shape
    A = w2.shape[1]
    assert D == n_agents * obs_dim, "W1 rows must equal n_agents * obs_dim"

    # ---- lane-dense output: pad n_actions up to a full 128-lane vreg. ----
    A_pad = _round_up(max(A, 128), 128)
    w2_p = jnp.zeros((H, A_pad), w2.dtype).at[:, :A].set(w2)
    b2_p = jnp.zeros((1, A_pad), jnp.float32).at[:, :A].set(b2)

    # ---- batch tiling: tile is a multiple of 16 (bf16 sublane packing). ----
    tb = min(block_batch, _round_up(B, 16))
    tb = _round_up(tb, 16)
    B_pad = _round_up(B, tb)

    # bf16 matmul inputs halve HBM->VMEM traffic; accumulation stays f32.
    obs_bf = []
    for o in observation_list:
        o = o.astype(jnp.bfloat16)
        if B_pad != B:
            o = jnp.pad(o, ((0, B_pad - B), (0, 0)))
        obs_bf.append(o)
    w1_bf = w1.astype(jnp.bfloat16)
    w2_bf = w2_p.astype(jnp.bfloat16)
    b1_f = b1.astype(jnp.float32)
    b2_f = b2_p.astype(jnp.float32)

    grid = (B_pad // tb,)

    # Per-agent observation tiles march over the batch; weights/biases use a
    # constant index_map so they stay VMEM-resident across grid iterations.
    obs_specs = [
        pl.BlockSpec((tb, obs_dim), lambda i: (i, 0)) for _ in range(n_agents)
    ]
    weight_specs = [
        pl.BlockSpec((D, H), lambda i: (0, 0)),        # W1 (all agents, resident)
        pl.BlockSpec((1, H), lambda i: (0, 0)),        # b1
        pl.BlockSpec((H, A_pad), lambda i: (0, 0)),    # W2 (lane-padded)
        pl.BlockSpec((1, A_pad), lambda i: (0, 0)),    # b2 (lane-padded)
    ]

    kernel = _make_fused_q_kernel(n_agents, obs_dim)

    q_pad = pl.pallas_call(
        kernel,
        out_shape=jax.ShapeDtypeStruct((B_pad, A_pad), jnp.float32),
        grid_spec=pltpu.PrefetchScalarGridSpec(
            num_scalar_prefetch=0,
            grid=grid,
            in_specs=obs_specs + weight_specs,
            out_specs=pl.BlockSpec((tb, A_pad), lambda i: (i, 0)),
        ),
        compiler_params=pltpu.CompilerParams(
            dimension_semantics=("parallel",),
        ),
    )(*obs_bf, w1_bf, b1_f, w2_bf, b2_f)

    # Slice away batch padding and the lane padding of the action dim.
    return q_pad[:B, :A]


def init_params(key, obs_dim_total, hidden, n_actions):
    """Deterministic in-script parameter init (matches nn.Linear shapes)."""
    k1, k2, k3, k4 = jax.random.split(key, 4)
    lim1 = 1.0 / jnp.sqrt(obs_dim_total)
    lim2 = 1.0 / jnp.sqrt(hidden)
    w1 = jax.random.uniform(k1, (obs_dim_total, hidden), jnp.float32, -lim1, lim1)
    b1 = jax.random.uniform(k2, (1, hidden), jnp.float32, -lim1, lim1)
    w2 = jax.random.uniform(k3, (hidden, n_actions), jnp.float32, -lim2, lim2)
    b2 = jax.random.uniform(k4, (1, n_actions), jnp.float32, -lim2, lim2)
    return w1, b1, w2, b2


if __name__ == "__main__":
    key = jax.random.PRNGKey(0)

    # Small, module-consistent shapes: 2 agents, batch=8, per-agent obs dim=16.
    # hidden=128 keeps the contraction / hidden lane axis full.
    batch = 8
    n_agents = 2
    obs_dim = 16
    hidden = 128
    n_actions = 8

    k_obs, k_params = jax.random.split(key)
    obs_keys = jax.random.split(k_obs, n_agents)
    observation_list = [
        jax.random.normal(k, (batch, obs_dim), jnp.float32) for k in obs_keys
    ]

    params = init_params(k_params, n_agents * obs_dim, hidden, n_actions)

    q = your_dnn_forward(observation_list, params)
    jax.block_until_ready(q)

    # Pure-JAX reference with matching bf16 matmul-input casts.
    w1, b1, w2, b2 = params
    x_bf = jnp.concatenate(observation_list, axis=-1).astype(jnp.bfloat16)
    h_ref = jnp.dot(x_bf, w1.astype(jnp.bfloat16),
                    preferred_element_type=jnp.float32)
    h_ref = jnp.maximum(h_ref + b1, 0.0)
    q_ref = jnp.dot(h_ref.astype(jnp.bfloat16), w2.astype(jnp.bfloat16),
                    preferred_element_type=jnp.float32) + b2

    assert q.shape == (batch, n_actions)
    assert jnp.allclose(q, q_ref, atol=1e-3, rtol=1e-3)

    print("KERNEL_OK")
</pallas_src>

<mosaic_0001>
module attributes {stable_mosaic.version = 11 : i64} {
  func.func @kernel(%arg0: i32, %arg1: memref<16x16xbf16, #tpu.memory_space<vmem>>, %arg2: memref<16x16xbf16, #tpu.memory_space<vmem>>, %arg3: memref<32x128xbf16, #tpu.memory_space<vmem>>, %arg4: memref<1x128xf32, #tpu.memory_space<vmem>>, %arg5: memref<128x128xbf16, #tpu.memory_space<vmem>>, %arg6: memref<1x128xf32, #tpu.memory_space<vmem>>, %arg7: memref<16x128xf32, #tpu.memory_space<vmem>>) attributes {dimension_semantics = [#tpu.dimension_semantics<parallel>], iteration_bounds = array<i64: 1>, scalar_prefetch = 0 : i64, scratch_operands = 0 : i64, tpu.core_type = #tpu.core_type<tc>, window_params = [{transform_indices = @transform_0, window_bounds = array<i64: 16, 16>}, {transform_indices = @transform_1, window_bounds = array<i64: 16, 16>}, {pipeline_mode = #tpu.pipeline_mode<synchronous>, transform_indices = @transform_2, window_bounds = array<i64: 32, 128>}, {pipeline_mode = #tpu.pipeline_mode<synchronous>, transform_indices = @transform_3, window_bounds = array<i64: 1, 128>}, {pipeline_mode = #tpu.pipeline_mode<synchronous>, transform_indices = @transform_4, window_bounds = array<i64: 128, 128>}, {pipeline_mode = #tpu.pipeline_mode<synchronous>, transform_indices = @transform_5, window_bounds = array<i64: 1, 128>}, {transform_indices = @transform_6, window_bounds = array<i64: 16, 128>}]} {
    %c0 = arith.constant 0 : index
    %c0_0 = arith.constant 0 : index
    %0 = vector.load %arg1[%c0, %c0_0] : memref<16x16xbf16, #tpu.memory_space<vmem>>, vector<16x16xbf16>
    %c0_1 = arith.constant 0 : index
    %c0_2 = arith.constant 0 : index
    %1 = vector.load %arg3[%c0_1, %c0_2] : memref<32x128xbf16, #tpu.memory_space<vmem>>, vector<16x128xbf16>
    %cst = arith.constant dense<0.000000e+00> : vector<16x128xf32>
    %2 = tpu.matmul %0, %1, %cst {dimension_numbers = #tpu.dot_dimension_numbers<[1], [0], [0], [1], [0, 0, 1, 1], [], []>} : vector<16x16xbf16>, vector<16x128xbf16>, vector<16x128xf32> -> vector<16x128xf32>
    %c0_3 = arith.constant 0 : index
    %c0_4 = arith.constant 0 : index
    %3 = vector.load %arg2[%c0_3, %c0_4] : memref<16x16xbf16, #tpu.memory_space<vmem>>, vector<16x16xbf16>
    %c16 = arith.constant 16 : index
    %c0_5 = arith.constant 0 : index
    %4 = vector.load %arg3[%c16, %c0_5] : memref<32x128xbf16, #tpu.memory_space<vmem>>, vector<16x128xbf16>
    %cst_6 = arith.constant dense<0.000000e+00> : vector<16x128xf32>
    %5 = tpu.matmul %3, %4, %cst_6 {dimension_numbers = #tpu.dot_dimension_numbers<[1], [0], [0], [1], [0, 0, 1, 1], [], []>} : vector<16x16xbf16>, vector<16x128xbf16>, vector<16x128xf32> -> vector<16x128xf32>
    %6 = arith.addf %2, %5 : vector<16x128xf32>
    %c0_7 = arith.constant 0 : index
    %c0_8 = arith.constant 0 : index
    %7 = vector.load %arg4[%c0_7, %c0_8] : memref<1x128xf32, #tpu.memory_space<vmem>>, vector<1x128xf32>
    %8 = vector.broadcast %7 : vector<1x128xf32> to vector<16x128xf32>
    %9 = arith.addf %6, %8 : vector<16x128xf32>
    %cst_9 = arith.constant 0.000000e+00 : f32
    %10 = vector.broadcast %cst_9 : f32 to vector<16x128xf32>
    %11 = arith.maximumf %9, %10 : vector<16x128xf32>
    %12 = arith.truncf %11 : vector<16x128xf32> to vector<16x128xbf16>
    %c0_10 = arith.constant 0 : index
    %c0_11 = arith.constant 0 : index
    %13 = vector.load %arg5[%c0_10, %c0_11] : memref<128x128xbf16, #tpu.memory_space<vmem>>, vector<128x128xbf16>
    %cst_12 = arith.constant dense<0.000000e+00> : vector<16x128xf32>
    %14 = tpu.matmul %12, %13, %cst_12 {dimension_numbers = #tpu.dot_dimension_numbers<[1], [0], [0], [1], [0, 0, 1, 1], [], []>} : vector<16x128xbf16>, vector<128x128xbf16>, vector<16x128xf32> -> vector<16x128xf32>
    %c0_13 = arith.constant 0 : index
    %c0_14 = arith.constant 0 : index
    %15 = vector.load %arg6[%c0_13, %c0_14] : memref<1x128xf32, #tpu.memory_space<vmem>>, vector<1x128xf32>
    %16 = vector.broadcast %15 : vector<1x128xf32> to vector<16x128xf32>
    %17 = arith.addf %14, %16 : vector<16x128xf32>
    %c0_15 = arith.constant 0 : index
    %c0_16 = arith.constant 0 : index
    %18 = vector.load %arg7[%c0_15, %c0_16] : memref<16x128xf32, #tpu.memory_space<vmem>>, vector<16x128xf32>
    tpu.vector_store %arg7[%c0_15, %c0_16], %17 {strides = array<i32>} : memref<16x128xf32, #tpu.memory_space<vmem>>, vector<16x128xf32>,
    return
  }
  func.func @transform_0(%arg0: i32) -> (i32, i32) {
    %c0_i32 = arith.constant 0 : i32
    %c0_i32_0 = arith.constant 0 : i32
    return %arg0, %c0_i32 : i32, i32
  }
  func.func @transform_1(%arg0: i32) -> (i32, i32) {
    %c0_i32 = arith.constant 0 : i32
    %c0_i32_0 = arith.constant 0 : i32
    return %arg0, %c0_i32 : i32, i32
  }
  func.func @transform_2(%arg0: i32) -> (i32, i32) {
    %c0_i32 = arith.constant 0 : i32
    %c0_i32_0 = arith.constant 0 : i32
    %c0_i32_1 = arith.constant 0 : i32
    return %c0_i32, %c0_i32_0 : i32, i32
  }
  func.func @transform_3(%arg0: i32) -> (i32, i32) {
    %c0_i32 = arith.constant 0 : i32
    %c0_i32_0 = arith.constant 0 : i32
    %c0_i32_1 = arith.constant 0 : i32
    return %c0_i32, %c0_i32_0 : i32, i32
  }
  func.func @transform_4(%arg0: i32) -> (i32, i32) {
    %c0_i32 = arith.constant 0 : i32
    %c0_i32_0 = arith.constant 0 : i32
    %c0_i32_1 = arith.constant 0 : i32
    return %c0_i32, %c0_i32_0 : i32, i32
  }
  func.func @transform_5(%arg0: i32) -> (i32, i32) {
    %c0_i32 = arith.constant 0 : i32
    %c0_i32_0 = arith.constant 0 : i32
    %c0_i32_1 = arith.constant 0 : i32
    return %c0_i32, %c0_i32_0 : i32, i32
  }
  func.func @transform_6(%arg0: i32) -> (i32, i32) {
    %c0_i32 = arith.constant 0 : i32
    %c0_i32_0 = arith.constant 0 : i32
    return %arg0, %c0_i32 : i32, i32
  }
}

</mosaic_0001>

<bundles_post_ra>
// kernel: tpu_custom_call.1
= control target key start
LH: loop header
LB: loop body
LE: loop exit
PB: predicated region body
PF: predicated region fallthrough
CT: control target
= control target key end

     0   :  { %11 = vsyncpa [#allocation3], 0  ;;  %s684_s0 = inlined_call_operand.hbm [shape: bf16[16,16], index: 0, kind: input, shape index: {}]   ;;  %s685_s1 = inlined_call_operand.hbm [shape: bf16[16,16], index: 1, kind: input, shape index: {}]   ;;  %s686_s2 = inlined_call_operand.hbm [shape: bf16[32,128], index: 2, kind: input, shape index: {}]   ;;  %s687_s3 = inlined_call_operand.vmem [shape: f32[1,128], index: 3, kind: input, shape index: {}]   ;;  %s688_s4 = inlined_call_operand.hbm [shape: bf16[128,128], index: 4, kind: input, shape index: {}]   ;;  %s689_s5 = inlined_call_operand.vmem [shape: f32[1,128], index: 5, kind: input, shape index: {}]   ;;  %s690_s6 = inlined_call_operand.hbm [shape: f32[16,128], index: 6, kind: output, shape index: {}]  }
   0x1   :  { %12 = vsyncpa [#allocation6], 0 }
   0x2   :  { %13 = vsyncpa [#allocation9], 0 }
   0x3   :  { %14 = vsyncpa [#allocation4], 0  ;;  %s546_s21 = smov [#allocation5]   ;;  %s547_s23 = smov [#allocation2]  }
   0x4   :  { %s32_s22 = sshll.u32 %s546_s21, 4  ;;  %s20_s24 = sshll.u32 %s547_s23, 4  ;;  %s33_s22 = int_to_ptr.vmem [resolvable:$true] %s32_s22  ;;  %s592_s24 = int_to_ptr.vmem [resolvable:$true] %s20_s24 }
   0x5   :  { %s428_s27 = scalar_lea.hbm %s685_s1, 128 }
   0x6   :  { %p429_p0 = scmp.ne.s32.totalorder %s685_s1, %s428_s27  ;;  %p432_p1 = scmp.lt.u32.totalorder %s428_s27, %s685_s1 }
   0x8   :  { %p434_p2 = pnand %p432_p1, %p429_p0 }
   0xa   :  { %437 = shalt.err (!%p434_p2)
}
   0xb   :  { %s438_s8 = scalar_lea.vmem %s33_s22, 128  ;;  %p443_p4 = scmp.lt.s32.totalorder %s33_s22, %s33_s22 }
   0xc   :  { %p439_p3 = scmp.ne.s32.totalorder %s33_s22, %s438_s8  ;;  %p444_p5 = scmp.lt.s32.totalorder %s438_s8, %s438_s8 }
   0xe   :  { %p445_p6 = por %p444_p5, %p443_p4 }
  0x10   :  { %p446_p7 = pnand %p445_p6, %p439_p3 }
  0x12   :  { %449 = shalt.err (!%p446_p7)
}
  0x13   :  { %s548_s9 = smov 64   ;;  %s549_s10 = smov 4  }
  0x14   :  { %38 = dma.hbm_to_vmem [thread:$0]  %s685_s1, 128, %s33_s22, [#allocation6], %s548_s9, %s548_s9, %s549_s10  }
  0x15   :  { %s450_s15 = scalar_lea.hbm %s684_s0, 128 }
  0x16   :  { %p451_p8 = scmp.ne.s32.totalorder %s684_s0, %s450_s15  ;;  %p454_p9 = scmp.lt.u32.totalorder %s450_s15, %s684_s0 }
  0x18   :  { %p456_p10 = pnand %p454_p9, %p451_p8 }
  0x1a   :  { %459 = shalt.err (!%p456_p10)
}
  0x1b   :  { %s460_s20 = scalar_lea.vmem %s592_s24, 128  ;;  %p465_p12 = scmp.lt.s32.totalorder %s592_s24, %s592_s24 }
  0x1c   :  { %p461_p11 = scmp.ne.s32.totalorder %s592_s24, %s460_s20  ;;  %p466_p13 = scmp.lt.s32.totalorder %s460_s20, %s460_s20 }
  0x1e   :  { %p467_p0 = por %p466_p13, %p465_p12 }
  0x20   :  { %p468_p1 = pnand %p467_p0, %p461_p11 }
  0x22   :  { %471 = shalt.err (!%p468_p1)
}
  0x23   :  { %26 = dma.hbm_to_vmem [thread:$0]  %s684_s0, 128, %s592_s24, [#allocation3], %s548_s9, %s548_s9, %s549_s10  }
  0x24   :  { %s550_s22 = smov [#allocation7]   ;;  %s551_s25 = smov [#allocation8]  }
  0x25   :  { %s44_s23 = sshll.u32 %s550_s22, 4  ;;  %s58_s26 = sshll.u32 %s551_s25, 4  ;;  %s45_s23 = int_to_ptr.vmem [resolvable:$true] %s44_s23  ;;  %s629_s26 = int_to_ptr.vmem [resolvable:$true] %s58_s26 }
  0x26   :  { %s472_s29 = scalar_lea.hbm %s686_s2, 256 }
  0x27   :  { %p473_p2 = scmp.ne.s32.totalorder %s686_s2, %s472_s29  ;;  %p476_p3 = scmp.lt.u32.totalorder %s472_s29, %s686_s2 }
  0x29   :  { %p478_p4 = pnand %p476_p3, %p473_p2 }
  0x2b   :  { %481 = shalt.err (!%p478_p4)
}
  0x2c   :  { %s482_s0 = scalar_lea.vmem %s45_s23, 256  ;;  %p487_p6 = scmp.lt.s32.totalorder %s45_s23, %s45_s23 }
  0x2d   :  { %p483_p5 = scmp.ne.s32.totalorder %s45_s23, %s482_s0  ;;  %p488_p7 = scmp.lt.s32.totalorder %s482_s0, %s482_s0 }
  0x2f   :  { %p489_p8 = por %p488_p7, %p487_p6 }
  0x31   :  { %p490_p9 = pnand %p489_p8, %p483_p5 }
  0x33   :  { %493 = shalt.err (!%p490_p9)
}
  0x34   :  { %50 = dma.hbm_to_vmem [thread:$0]  %s686_s2, 256, %s45_s23, [#allocation6], %s548_s9, %s548_s9, %s549_s10  }
  0x35   :  { %s494_s15 = scalar_lea.hbm %s688_s4, 1024 }
  0x36   :  { %p495_p10 = scmp.ne.s32.totalorder %s688_s4, %s494_s15  ;;  %p498_p11 = scmp.lt.u32.totalorder %s494_s15, %s688_s4 }
  0x38   :  { %p500_p12 = pnand %p498_p11, %p495_p10 }
  0x3a   :  { %503 = shalt.err (!%p500_p12)
}
  0x3b   :  { %s504_s20 = scalar_lea.vmem %s629_s26, 1024  ;;  %p509_p0 = scmp.lt.s32.totalorder %s629_s26, %s629_s26 }
  0x3c   :  { %p505_p13 = scmp.ne.s32.totalorder %s629_s26, %s504_s20  ;;  %p510_p1 = scmp.lt.s32.totalorder %s504_s20, %s504_s20 }
  0x3e   :  { %p511_p2 = por %p510_p1, %p509_p0 }
  0x40   :  { %p512_p3 = pnand %p511_p2, %p505_p13 }
  0x42   :  { %515 = shalt.err (!%p512_p3)
}
  0x43   :  { %64 = dma.hbm_to_vmem [thread:$0]  %s688_s4, 1024, %s629_s26, [#allocation9], %s548_s9, %s548_s9, %s549_s10  }
  0x44   :  { %538 = dma.done.wait [#allocation3], 128  }
  0x45   :  { %539 = vsyncadd [#allocation3], 4294967168 }
  0x46   :  { %540 = dma.done.wait [#allocation6], 384  }
  0x47   :  { %541 = vsyncadd [#allocation6], 4294966912 }
  0x48   :  { %542 = dma.done.wait [#allocation9], 1024  }
  0x49   :  { %543 = vsyncadd [#allocation9], 4294966272  ;;  %v552_v0 = vmov 0.0   ;;  %vm553_vm0 = vmmov 0   ;;  %v416_v1 = vld [vmem:[#allocation7 + $0x8] sm:$0xff]   ;;  %v417_v2 = vld [vmem:[#allocation5] sm:$0xff]  }
  0x4a   :  { %373 = vmatprep.subr.bf16.mxu1 %v552_v0  ;;  %375 = vmatprep.mubr.msk.bf16.mxu1 %vm553_vm0, %v552_v0  ;;  %vm99_vm1 = vcmask 130048   ;;  %v418_v3 = vld [vmem:[#allocation7] sm:$0xff]   ;;  %v420_v4 = vld [vmem:[#allocation8] sm:$0xff]   ;;  %v421_v5 = vld [vmem:[#allocation8 + $0x8] sm:$0xff]   ;;  %s554_s22 = smov [#allocation10]  }
  0x4b   :  { %385 = vmatprep.subr.bf16.mxu0 %v552_v0  ;;  %401 = vmatprep.mubr.msk.bf16.mxu0 %vm553_vm0, %v552_v0  ;;  %v419_v6 = vld [vmem:[#allocation2] sm:$0xff]   ;;  %v422_v7 = vld [vmem:[#allocation8 + $0x10] sm:$0xff]   ;;  %v423_v8 = vld [vmem:[#allocation8 + $0x18] sm:$0xff]   ;;  %s330_s23 = sshll.u32 %s554_s22, 4  ;;  %s331_s23 = int_to_ptr.vmem [resolvable:$true] %s330_s23 }
  0x4c   :  { %374 = vmatpush3.bf16.msra.mxu1 %v416_v1  ;;  %386 = vmatpush3.bf16.msra.mxu0 %v420_v4  ;;  %v424_v9 = vld [vmem:[#allocation8 + $0x20] sm:$0xff]   ;;  %v425_v10 = vld [vmem:[#allocation8 + $0x28] sm:$0xff]   ;;  %v426_v11 = vld [vmem:[#allocation8 + $0x30] sm:$0xff]   ;;  %p521_p5 = scmp.lt.s32.totalorder %s331_s23, %s331_s23 }
  0x4d   :  { %379 = vmatprep.subr.bf16.mxu1 %v552_v0  ;;  %387 = vmatprep.subr.bf16.mxu0 %v552_v0  ;;  %v427_v12 = vld [vmem:[#allocation8 + $0x38] sm:$0xff]   ;;  %v350_v18 = vld [vmem:[%s687_s3] ss:$0 sm:$0xff]  ;;  %s516_s3 = scalar_lea.vmem %s331_s23, 256 }
  0x4e   :  { %v351_v29 = vld [vmem:[%s689_s5] ss:$0 sm:$0xff]  ;;  %p517_p4 = scmp.ne.s32.totalorder %s331_s23, %s516_s3  ;;  %p522_p6 = scmp.lt.s32.totalorder %s516_s3, %s516_s3 }
  0x4f   :  { %376 = vmatmul.mubr.msk.bf16.vlgmr.msra.gmra.mrb[0].mxu1 %vm99_vm1, %v417_v2 }
  0x50   :  { %380 = vmatpush3.bf16.msra.mxu1 %v418_v3  ;;  %381 = vmatprep.mubr.msk.bf16.mxu1 %vm553_vm0, %v552_v0  ;;  %p523_p7 = por %p522_p6, %p521_p5 }
  0x51   :  { %388 = vmatpush3.bf16.msra.mxu0 %v421_v5 }
  0x52   :  { %389 = vmatprep.subr.bf16.mxu0 %v552_v0  ;;  %p524_p8 = pnand %p523_p7, %p517_p4 }
  0x55   :  { %390 = vmatpush3.bf16.msra.mxu0 %v422_v7 }
  0x56   :  { %391 = vmatprep.subr.bf16.mxu0 %v552_v0 }
  0x57   :  { %382 = vmatmul.mubr.msk.bf16.vlgmr.msra.gmra.mrb[4].mxu1 %vm99_vm1, %v419_v6 }
  0x59   :  { %392 = vmatpush3.bf16.msra.mxu0 %v423_v8 }
  0x5a   :  { %393 = vmatprep.subr.bf16.mxu0 %v552_v0 }
  0x5d   :  { %394 = vmatpush3.bf16.msra.mxu0 %v424_v9 }
  0x5e   :  { %395 = vmatprep.subr.bf16.mxu0 %v552_v0 }
  0x61   :  { %396 = vmatpush3.bf16.msra.mxu0 %v425_v10 }
  0x62   :  { %397 = vmatprep.subr.bf16.mxu0 %v552_v0 }
  0x65   :  { %398 = vmatpush3.bf16.msra.mxu0 %v426_v11 }
  0x66   :  { %399 = vmatprep.subr.bf16.mxu0 %v552_v0 }
  0x69   :  { %400 = vmatpush3.bf16.msra.mxu0 %v427_v12 }
 0x122   :  { %v137_v13 = vpop.f32.mrb[0].mxu1 }
 0x123   :  { %v377_v14 = vpop.f32.mrb[1].mxu1 }
 0x124   :  { %v140_v15 = vpop.f32.mrb[2].mxu1 }
 0x125   :  { %v378_v16 = vpop.f32.mrb[3].mxu1 }
 0x12a   :  { %v192_v17 = vpop.f32.mrb[4].mxu1 }
 0x12b   :  { %v193_v19 = vadd.f32 %v192_v17, %v137_v13  ;;  %v383_v20 = vpop.f32.mrb[5].mxu1 }
 0x12c   :  { %v195_v21 = vpop.f32.mrb[6].mxu1 }
 0x12d   :  { %v206_v22 = vadd.f32 %v350_v18, %v193_v19  ;;  %v196_v23 = vadd.f32 %v195_v21, %v140_v15  ;;  %v384_v24 = vpop.f32.mrb[7].mxu1 }
 0x12f   :  { %v207_v25 = vadd.f32 %v350_v18, %v196_v23  ;;  %v208_v26 = vmax.f32 %v206_v22, 0.0 }
 0x131   :  { %v209_v27 = vmax.f32 %v207_v25, 0.0 }
 0x133   :  { %v210_v28 = vpack.c.bf16 %v209_v27, %v208_v26 }
 0x135   :  { %402 = vmatmul.mubr.bf16.vlgmr.msra.gmra.mrb[0].mxu0 %v210_v28 }
 0x208   :  { %v316_v30 = vpop.f32.mrb[0].mxu0 }
 0x209   :  { %v317_v31 = vadd.f32 %v351_v29, %v316_v30  ;;  %v403_v32 = vpop.f32.mrb[1].mxu0 }
 0x20a   :  { %v319_v33 = vpop.f32.mrb[2].mxu0 }
 0x20b   :  { %323 = vst [vmem:[#allocation10] sm:$0xff] %v317_v31  ;;  %v320_v34 = vadd.f32 %v351_v29, %v319_v33  ;;  %v404_v35 = vpop.f32.mrb[3].mxu0 }
 0x20d   :  { %324 = vst [vmem:[#allocation10 + $0x8] sm:$0xff] %v320_v34 }
 0x20e   :  { %527 = shalt.err (!%p524_p8)
}
 0x20f   :  { %s528_s26 = scalar_lea.hbm %s690_s6, 256 }
 0x210   :  { %p529_p9 = scmp.ne.s32.totalorder %s690_s6, %s528_s26  ;;  %p532_p10 = scmp.lt.u32.totalorder %s528_s26, %s690_s6 }
 0x212   :  { %p534_p11 = pnand %p532_p10, %p529_p9 }
 0x214   :  { %537 = shalt.err (!%p534_p11)
}
 0x215   :  { %s555_s7 = smov 128   ;;  %s556_s8 = smov 8  }
 0x216   :  { %336 = dma.vmem_to_hbm [thread:$0]  %s331_s23, 256, %s690_s6, [#allocation4], %s555_s7, %s555_s7, %s556_s8  }
 0x217   :  { %544 = dma.done.wait [#allocation4], 256  }
 0x218   :  { %545 = vsyncadd [#allocation4], 4294967040 }
 0x219   :  { %340 = vsyncpa [#allocation3], 1 }
 0x21a   :  { %341 = vsyncpa [#allocation6], 1 }
 0x21b   :  { %342 = vsyncpa [#allocation9], 1 }
 0x21c   :  { %343 = vsyncpa [#allocation4], 1 }

</bundles_post_ra>
